<compile_context>
chip_gen: v7x
topology: tpu7x:2x2x1
jax: 0.10.0
libtpu: 0.0.40
codegen_flags: <defaults>
</compile_context>

<pallas_src>
import functools

import jax
import jax.numpy as jnp
from jax import lax
from jax.experimental import pallas as pl
from jax.experimental.pallas import tpu as pltpu


def _ce_kernel(logits_ref, labels_ref, loss_ref, acc_ref, *, n_total):
    """One batch tile of mean cross-entropy.

    logits_ref: [TILE_N, C] (native dtype)   labels_ref: [TILE_N, 1] int32
    loss_ref:   [1, 1] f32 output            acc_ref:    [1, 1] f32 scratch
    """
    step = pl.program_id(0)
    n_steps = pl.num_programs(0)

    @pl.when(step == 0)
    def _():
        acc_ref[...] = jnp.zeros_like(acc_ref)

    x = logits_ref[...]                                   # [TN, C]
    labels = labels_ref[...]                              # [TN, 1] int32
    tn, c = x.shape

    # Numerically stable pieces; keep max/subtract in the input dtype and only
    # upcast the shifted tile to f32 for exp / accumulation.
    row_max = jnp.max(x, axis=-1, keepdims=True)          # [TN, 1]
    shifted = (x - row_max).astype(jnp.float32)           # [TN, C] f32, <= 0

    # loss_i = logsumexp(logits_i) - logits_i[label_i]
    #        = log(sum(exp(shifted_i))) - shifted_i[label_i]   (row_max cancels)
    cls_ids = lax.broadcasted_iota(jnp.int32, (tn, c), 1)
    sel = jnp.sum(jnp.where(cls_ids == labels, shifted, 0.0),
                  axis=-1, keepdims=True)                 # [TN, 1]
    lse = jnp.log(jnp.sum(jnp.exp(shifted), axis=-1, keepdims=True))  # [TN, 1]

    # Mask rows that fall past the true batch size (padded final tile).
    row_ids = step * tn + lax.broadcasted_iota(jnp.int32, (tn, 1), 0)
    contrib = jnp.where(row_ids < n_total, lse - sel, 0.0)

    acc_ref[...] = acc_ref[...] + jnp.sum(contrib)

    @pl.when(step == n_steps - 1)
    def _():
        # Divide exactly once, by the true batch size.
        loss_ref[...] = acc_ref[...] * jnp.float32(1.0 / n_total)


def _choose_block_rows(n, c, itemsize, block_rows=None):
    if block_rows is None:
        # ~2 MiB per logits tile in its native dtype; Pallas double-buffers the
        # tile and the kernel holds an f32 copy, keeping the working set well
        # inside scoped VMEM on v5e/v6e/v7x while amortizing per-step overhead.
        target_bytes = 2 * 1024 * 1024
        block_rows = target_bytes // max(1, c * itemsize)
    block_rows = int(min(block_rows, 1024))
    if block_rows >= n:
        return n                                        # single full-batch block
    return max(8, block_rows - (block_rows % 8))        # sublane-aligned tiles


def asoftmax_loss(outputs: jax.Array, labels: jax.Array, *, block_rows=None) -> dict:
    """Pallas equivalent of ASoftmax.forward: {'loss': CrossEntropyLoss(outputs, labels)}."""
    n, c = outputs.shape
    itemsize = jnp.dtype(outputs.dtype).itemsize
    tn = _choose_block_rows(n, c, itemsize, block_rows)
    num_tiles = pl.cdiv(n, tn)

    labels_2d = labels.astype(jnp.int32).reshape(n, 1)

    kernel = functools.partial(_ce_kernel, n_total=n)
    loss = pl.pallas_call(
        kernel,
        out_shape=jax.ShapeDtypeStruct((1, 1), jnp.float32),
        grid=(num_tiles,),
        in_specs=[
            pl.BlockSpec((tn, c), lambda i: (i, 0)),   # logits tile (pipelined)
            pl.BlockSpec((tn, 1), lambda i: (i, 0)),   # matching label rows
        ],
        out_specs=pl.BlockSpec((1, 1), lambda i: (0, 0)),
        scratch_shapes=[pltpu.VMEM((1, 1), jnp.float32)],
        compiler_params=pltpu.CompilerParams(
            dimension_semantics=("arbitrary",),
            vmem_limit_bytes=32 * 1024 * 1024,
        ),
        cost_estimate=pl.CostEstimate(
            flops=5 * n * c,
            transcendentals=n * c,
            bytes_accessed=n * c * itemsize + n * 4 + 4,
        ),
    )(outputs, labels_2d)

    return {"loss": loss[0, 0]}


def _reference_loss(outputs, labels):
    # plain-JAX reference (mean cross entropy), for sanity checking
    logp = jax.nn.log_softmax(outputs.astype(jnp.float32), axis=-1)
    nll = -jnp.take_along_axis(logp, labels[:, None].astype(jnp.int32), axis=-1)[:, 0]
    return jnp.mean(nll)


if __name__ == "__main__":
    key = jax.random.PRNGKey(0)

    # Case 1: multi-tile batch (grid of 3 tiles, 8 rows each).
    k1, k2 = jax.random.split(key)
    N1, C1 = 24, 32
    out1 = jax.random.normal(k1, (N1, C1), dtype=jnp.float32)
    lab1 = jax.random.randint(k2, (N1,), 0, C1, dtype=jnp.int32)
    loss1 = jax.block_until_ready(asoftmax_loss(out1, lab1, block_rows=8)["loss"])
    ref1 = jax.block_until_ready(_reference_loss(out1, lab1))
    assert jnp.allclose(loss1, ref1, rtol=1e-5, atol=1e-5), (loss1, ref1)

    # Case 2: batch not divisible by the tile (padded final tile is masked).
    k3, k4 = jax.random.split(k2)
    N2, C2 = 20, 32
    out2 = jax.random.normal(k3, (N2, C2), dtype=jnp.float32)
    lab2 = jax.random.randint(k4, (N2,), 0, C2, dtype=jnp.int32)
    loss2 = jax.block_until_ready(asoftmax_loss(out2, lab2, block_rows=8)["loss"])
    ref2 = jax.block_until_ready(_reference_loss(out2, lab2))
    assert jnp.allclose(loss2, ref2, rtol=1e-5, atol=1e-5), (loss2, ref2)

    # Case 3: automatic tile size (single block), original demo shape.
    k5, k6 = jax.random.split(k4)
    N3, C3 = 8, 32
    out3 = jax.random.normal(k5, (N3, C3), dtype=jnp.float32)
    lab3 = jax.random.randint(k6, (N3,), 0, C3, dtype=jnp.int32)
    loss3 = jax.block_until_ready(asoftmax_loss(out3, lab3)["loss"])
    ref3 = jax.block_until_ready(_reference_loss(out3, lab3))
    assert jnp.allclose(loss3, ref3, rtol=1e-5, atol=1e-5), (loss3, ref3)

    print("KERNEL_OK")
</pallas_src>

<mosaic_0001>
module attributes {stable_mosaic.version = 11 : i64} {
  func.func @_ce_kernel(%arg0: i32, %arg1: memref<8x32xf32, #tpu.memory_space<vmem>>, %arg2: memref<8x1xi32, #tpu.memory_space<vmem>>, %arg3: memref<1x1xf32, #tpu.memory_space<vmem>>, %arg4: memref<1x1xf32, #tpu.memory_space<vmem>>) attributes {dimension_semantics = [#tpu.dimension_semantics<arbitrary>], iteration_bounds = array<i64: 3>, scalar_prefetch = 0 : i64, scratch_operands = 1 : i64, tpu.core_type = #tpu.core_type<tc>, window_params = [{transform_indices = @transform_0, window_bounds = array<i64: 8, 32>}, {transform_indices = @transform_1, window_bounds = array<i64: 8, 1>}, {pipeline_mode = #tpu.pipeline_mode<synchronous>, transform_indices = @transform_2, window_bounds = array<i64: 1, 1>}]} {
    %c0_i32 = arith.constant 0 : i32
    %0 = arith.cmpi eq, %arg0, %c0_i32 : i32
    %1 = arith.extui %0 : i1 to i32
    %c0_i32_0 = arith.constant 0 : i32
    %2 = arith.cmpi ne, %1, %c0_i32_0 : i32
    scf.if %2 {
      %cst_14 = arith.constant 0.000000e+00 : f32
      %40 = vector.broadcast %cst_14 : f32 to vector<1x1xf32>
      %c0_15 = arith.constant 0 : index
      %c0_16 = arith.constant 0 : index
      %41 = vector.load %arg4[%c0_15, %c0_16] : memref<1x1xf32, #tpu.memory_space<vmem>>, vector<1x1xf32>
      tpu.vector_store %arg4[%c0_15, %c0_16], %40 {strides = array<i32>} : memref<1x1xf32, #tpu.memory_space<vmem>>, vector<1x1xf32>,
    } else {
    }
    %c0 = arith.constant 0 : index
    %c0_1 = arith.constant 0 : index
    %3 = vector.load %arg1[%c0, %c0_1] : memref<8x32xf32, #tpu.memory_space<vmem>>, vector<8x32xf32>
    %c0_2 = arith.constant 0 : index
    %c0_3 = arith.constant 0 : index
    %4 = vector.load %arg2[%c0_2, %c0_3] : memref<8x1xi32, #tpu.memory_space<vmem>>, vector<8x1xi32>
    %cst = arith.constant dense<0xFF800000> : vector<8xf32>
    %5 = vector.multi_reduction <maximumf>, %3, %cst [1] : vector<8x32xf32> to vector<8xf32>
    %6 = vector.shape_cast %5 : vector<8xf32> to vector<8x1xf32>
    %7 = vector.broadcast %6 : vector<8x1xf32> to vector<8x32xf32>
    %8 = arith.subf %3, %7 : vector<8x32xf32>
    %9 = tpu.iota {dimensions = array<i32: 1>} : vector<8x32xi32>
    %10 = vector.broadcast %4 : vector<8x1xi32> to vector<8x32xi32>
    %11 = arith.cmpi eq, %9, %10 : vector<8x32xi32>
    %cst_4 = arith.constant 0.000000e+00 : f32
    %12 = vector.broadcast %cst_4 : f32 to vector<8x32xf32>
    %13 = arith.select %11, %8, %12 : vector<8x32xi1>, vector<8x32xf32>
    %cst_5 = arith.constant dense<0.000000e+00> : vector<8xf32>
    %14 = vector.multi_reduction <add>, %13, %cst_5 [1] : vector<8x32xf32> to vector<8xf32>
    %15 = vector.shape_cast %14 : vector<8xf32> to vector<8x1xf32>
    %16 = math.exp %8 : vector<8x32xf32>
    %cst_6 = arith.constant dense<0.000000e+00> : vector<8xf32>
    %17 = vector.multi_reduction <add>, %16, %cst_6 [1] : vector<8x32xf32> to vector<8xf32>
    %18 = vector.shape_cast %17 : vector<8xf32> to vector<8x1xf32>
    %19 = math.log %18 : vector<8x1xf32>
    %c8_i32 = arith.constant 8 : i32
    %20 = arith.muli %arg0, %c8_i32 : i32
    %21 = tpu.iota {dimensions = array<i32: 0>} : vector<8x1xi32>
    %22 = vector.broadcast %20 : i32 to vector<8x1xi32>
    %23 = arith.addi %22, %21 : vector<8x1xi32>
    %c24_i32 = arith.constant 24 : i32
    %24 = vector.broadcast %c24_i32 : i32 to vector<8x1xi32>
    %25 = arith.cmpi slt, %23, %24 : vector<8x1xi32>
    %26 = arith.subf %19, %15 : vector<8x1xf32>
    %cst_7 = arith.constant 0.000000e+00 : f32
    %27 = vector.broadcast %cst_7 : f32 to vector<8x1xf32>
    %28 = arith.select %25, %26, %27 : vector<8x1xi1>, vector<8x1xf32>
    %c0_8 = arith.constant 0 : index
    %c0_9 = arith.constant 0 : index
    %29 = vector.load %arg4[%c0_8, %c0_9] : memref<1x1xf32, #tpu.memory_space<vmem>>, vector<1x1xf32>
    %30 = vector.shape_cast %28 : vector<8x1xf32> to vector<1x8x1xf32>
    %cst_10 = arith.constant dense<0.000000e+00> : vector<1xf32>
    %31 = vector.multi_reduction <add>, %30, %cst_10 [1, 2] : vector<1x8x1xf32> to vector<1xf32>
    %32 = vector.shape_cast %31 : vector<1xf32> to vector<1x1x1xf32>
    %33 = vector.extract %32[0, 0, 0] : f32 from vector<1x1x1xf32>
    %34 = vector.broadcast %33 : f32 to vector<1x1xf32>
    %35 = arith.addf %29, %34 : vector<1x1xf32>
    %c0_11 = arith.constant 0 : index
    %c0_12 = arith.constant 0 : index
    %36 = vector.load %arg4[%c0_11, %c0_12] : memref<1x1xf32, #tpu.memory_space<vmem>>, vector<1x1xf32>
    tpu.vector_store %arg4[%c0_11, %c0_12], %35 {strides = array<i32>} : memref<1x1xf32, #tpu.memory_space<vmem>>, vector<1x1xf32>,
    %c2_i32 = arith.constant 2 : i32
    %37 = arith.cmpi eq, %arg0, %c2_i32 : i32
    %38 = arith.extui %37 : i1 to i32
    %c0_i32_13 = arith.constant 0 : i32
    %39 = arith.cmpi ne, %38, %c0_i32_13 : i32
    scf.if %39 {
      %c0_14 = arith.constant 0 : index
      %c0_15 = arith.constant 0 : index
      %40 = vector.load %arg4[%c0_14, %c0_15] : memref<1x1xf32, #tpu.memory_space<vmem>>, vector<1x1xf32>
      %cst_16 = arith.constant 0.0416666679 : f32
      %41 = vector.broadcast %cst_16 : f32 to vector<1x1xf32>
      %42 = arith.mulf %40, %41 : vector<1x1xf32>
      %c0_17 = arith.constant 0 : index
      %c0_18 = arith.constant 0 : index
      %43 = vector.load %arg3[%c0_17, %c0_18] : memref<1x1xf32, #tpu.memory_space<vmem>>, vector<1x1xf32>
      tpu.vector_store %arg3[%c0_17, %c0_18], %42 {strides = array<i32>} : memref<1x1xf32, #tpu.memory_space<vmem>>, vector<1x1xf32>,
    } else {
    }
    return
  }
  func.func @transform_0(%arg0: i32) -> (i32, i32) {
    %c0_i32 = arith.constant 0 : i32
    %c0_i32_0 = arith.constant 0 : i32
    return %arg0, %c0_i32 : i32, i32
  }
  func.func @transform_1(%arg0: i32) -> (i32, i32) {
    %c0_i32 = arith.constant 0 : i32
    %c0_i32_0 = arith.constant 0 : i32
    return %arg0, %c0_i32 : i32, i32
  }
  func.func @transform_2(%arg0: i32) -> (i32, i32) {
    %c0_i32 = arith.constant 0 : i32
    %c0_i32_0 = arith.constant 0 : i32
    %c0_i32_1 = arith.constant 0 : i32
    return %c0_i32, %c0_i32_0 : i32, i32
  }
}

</mosaic_0001>

<bundles_post_ra>
// kernel: tpu_custom_call.1
= control target key start
LH: loop header
LB: loop body
LE: loop exit
PB: predicated region body
PF: predicated region fallthrough
CT: control target
= control target key end

     0   :  { %7 = vsyncpa [#allocation4], 0  ;;  %s356_s9 = smov 0   ;;  %s406_s0 = inlined_call_operand.vmem [shape: f32[24,32], index: 0, kind: input, shape index: {}]   ;;  %s407_s1 = inlined_call_operand.vmem [shape: s32[24,1], index: 1, kind: input, shape index: {}]   ;;  %s408_s2 = inlined_call_operand.hbm [shape: f32[1,1], index: 2, kind: output, shape index: {}]  }
   0x1 LB: > { %s362_s10 = sadd.s32 4294967295, %s336_s9   ;;  %p266_p0 = scmp.ge.s32.totalorder %s336_s9, 1  ;;  %s336_s9 = sphi %s356_s9, %s13_s9  }
   0x2   : > { %p116_p1 = scmp.lt.s32.totalorder %s336_s9, 4 }
   0x4   : > { %p117_p2 = pnand %p266_p0, %p116_p1 }
   0x5   : > { %p136_p3 = scmp.lt.s32.totalorder (!%p117_p2), %s362_s10, 2  ;;  %p269_p4 = scmp.ne.s32.totalorder (!%p117_p2), %s362_s10, 0 }
   0x6   : > { %120 = sbr.rel (%p117_p2) target bundleno = 583 (0x247), region = 28 }
   0xd   : > { %s137_s11 = scalar_select %p136_p3, %s362_s10, 2 }
   0xe   : > { %147 = sbr.rel (%p269_p4) target bundleno = 21 (0x15), region = 32  ;;  %vm148_vm0 = vcmask (!%p269_p4), 0   ;;  %v338_v0 = vmov (!%p269_p4), 0.0  }
   0xf   : > { %s267_s12 = sshll.u32 %s137_s11, 3  ;;  %149 = vst.msk [vmem:[#allocation2] sm:$0x1] (!%p269_p4), %vm148_vm0, %v338_v0 }
  0x10   : > { %s139_s15 = scalar_lea.vmem %s406_s0, %s267_s12  ;;  %s143_s18 = scalar_lea.vmem %s407_s1, %s267_s12 }
  0x15 PF: > { %v150_v1 = vld [vmem:[%s139_s15] sm:$0xff]  ;;  %vm152_vm1 = vcmask 261120   ;;  %v339_v3 = vmov 0   ;;  %v157_v8 = vlaneseq  ;;  %s270_s19 = sshll.u32 %s362_s10, 3  ;;  %vm183_vm4 = vcmask 7168   ;;  %p271_p5 = scmp.ne.s32.totalorder %s362_s10, 2 }
  0x16   : > { %v153_v2 = vsel %vm152_vm1, %v150_v1, -inf  ;;  %295 = vset.pattern.permute.xlu0 %v339_v3  ;;  %v151_v4 = vld [vmem:[%s143_s18] sm:$0xff]  ;;  %v177_v17 = vstv %s270_s19  ;;  %vm196_vm5 = vcmask 0  }
  0x17   : > { %154 = vmax.xlane.f32.xlu0 %v153_v2  ;;  %v158_v9 = vand.u32 127, %v157_v8  ;;  %v176_v16 = vshrl.u32 %v157_v8, 7  ;;  %v182_v32 = vld [vmem:[#allocation2] sm:$0x1] }
  0x19   : > { %v178_v18 = vadd.s32 %v177_v17, %v176_v16 }
  0x1b   : > { %vm179_vm3 = vcmp.lt.s32.totalorder %v178_v18, 24 }
  0x2d   : > { %160 = vperm.xlu0 %295, %v151_v4  }
  0xa4   : > { %v155_v5 = vpop.xlane.xlu0 %154 }
  0xa5   : > { %v156_v6 = vsub.f32 %v150_v1, %v155_v5 }
  0xa7   : > { %v167_v7 = vmul.f32 1.442695, %v156_v6 }
  0xa9   : > { %296 = vpow2.f32 %v167_v7 }
  0xac   : > { %v161_v10 = vpop.permute.xlu0 %160 }
  0xad   : > { %vm162_vm2 = vcmp.eq.s32.totalorder %v158_v9, %v161_v10 }
  0xae   : > { %v163_v13 = vsel %vm162_vm2, %v156_v6, 0.0 }
  0xaf   : > { %v164_v14 = vsel %vm152_vm1, %v163_v13, 0.0 }
  0xb3   : > { %v297_v11 = vpop.eup %296 }
  0xb4   : > { %v169_v12 = vsel %vm152_vm1, %v297_v11, 0.0 }
  0xb5   : > { %170 = vadd.xlane.f32.xlu1 %v169_v12 }
  0xb9   : > { %165 = vadd.xlane.f32.xlu1 %v164_v14 }
 0x142   : > { %v171_v15 = vpop.xlane.xlu1 %170 }
 0x143   : > { %298 = vlog2.f32 %v171_v15 }
 0x146   : > { %v166_v21 = vpop.xlane.xlu1 %165 }
 0x14d   : > { %v299_v19 = vpop.eup %298 }
 0x14e   : > { %v173_v20 = vmul.f32 0.6931472, %v299_v19 }
 0x150   : > { %v180_v22 = vsub.f32 %v173_v20, %v166_v21 }
 0x152   : > { %v181_v23 = vsel %vm179_vm3, %v180_v22, 0.0 }
 0x153   : > { %v184_v24 = vsel %vm183_vm4, %v181_v23, 0.0 }
 0x154   : > { %185 = vadd.xlane.f32.xlu1 %v184_v24 }
 0x1e1   : > { %v186_v25 = vpop.xlane.xlu1 %185 }
 0x1e2   : > { %v187_v26 = vrot.slane %v186_v25, 4 }
 0x1e4   : > { %v188_v27 = vadd.f32 %v187_v26, %v186_v25 }
 0x1e6   : > { %v189_v28 = vrot.slane %v188_v27, 2 }
 0x1e8   : > { %v190_v29 = vadd.f32 %v189_v28, %v188_v27 }
 0x1ea   : > { %v191_v30 = vrot.slane %v190_v29, 1 }
 0x1ec   : > { %v192_v31 = vadd.f32 %v191_v30, %v190_v29 }
 0x1ee   : > { %276 = vpush %v192_v31 }
 0x21d   : > { %201 = sbr.rel (%p271_p5) target bundleno = 558 (0x22e), region = 36 }
 0x21f   : > { %s277_s20 = spop %276 }
 0x220   : > { %v194_v33 = vstv %s277_s20 }
 0x221   : > { %v195_v34 = vadd.f32 %v194_v33, %v182_v32 }
 0x223   : > { %197 = vst.msk [vmem:[#allocation2] sm:$0x1] %vm196_vm5, %v195_v34 }
 0x22a   : > { %v202_v35 = vld [vmem:[#allocation2] sm:$0x1] }
 0x22b   : > { %v203_v36 = vmul.f32 0.041666668, %v202_v35 }
 0x22d   : > { %204 = vst.msk [vmem:[#allocation3] sm:$0x1] %vm196_vm5, %v203_v36 }
 0x22e PF: > { %p282_p6 = scmp.eq.s32.totalorder %s362_s10, 2  ;;  %s340_s21 = smov [#allocation3]  }
 0x22f   : > { %s212_s22 = sshll.u32 %s340_s21, 4  ;;  %s213_s22 = int_to_ptr.vmem [resolvable:$true] %s212_s22 }
 0x230   : > { %s300_s23 = scalar_lea.vmem %s213_s22, 16  ;;  %s306_s24 = scalar_lea.vmem %s213_s22, 32 }
 0x231   : > { %p301_p7 = scmp.ne.s32.totalorder %s213_s22, %s300_s23  ;;  %p307_p10 = scmp.lt.s32.totalorder %s213_s22, %s213_s22 }
 0x232   : > { %p308_p11 = scmp.lt.s32.totalorder %s306_s24, %s300_s23 }
 0x233   : > { %p302_p8 = pnand %p301_p7, %p282_p6 }
 0x234   : > { %p309_p12 = por %p308_p11, %p307_p10 }
 0x235   : > { %p303_p9 = pneg %p302_p8 }
 0x237   : > { %p310_p13 = pnand %p309_p12, %p303_p9 }
 0x239   : > { %313 = shalt.err (!%p310_p13)
}
 0x23a   : > { %s314_s27 = scalar_lea.hbm %s408_s2, 16 }
 0x23b   : > { %p315_p0 = scmp.ne.s32.totalorder %s408_s2, %s314_s27  ;;  %p320_p3 = scmp.lt.u32.totalorder %s314_s27, %s408_s2 }
 0x23d   : > { %p316_p1 = pnand %p315_p0, %p282_p6 }
 0x23f   : > { %p317_p2 = pneg %p316_p1 }
 0x241   : > { %p322_p4 = pnand %p320_p3, %p317_p2 }
 0x243   : > { %325 = shalt.err (!%p322_p4)
}
 0x244   : > { %279 = dma.vmem_to_hbm [thread:$0]  (%p282_p6), %s213_s22, 16, %s408_s2, [#allocation4]  }
 0x245   : > { %331 = dma.done.wait (%p282_p6), [#allocation4], 16  }
 0x246   : > { %333 = vsyncadd (%p282_p6), [#allocation4], 4294967280 }
 0x247 PF: > { %s13_s9 = sadd.s32 1, %s336_s9  }
 0x248   : > { %p10_p5 = scmp.ge.s32.totalorder %s13_s9, 5  }
 0x24a   :  { %12 = sbr.rel (!%p10_p5) target bundleno = 1 (0x1), region = 66 }
 0x251   :  { %225 = vsyncpa [#allocation4], 1 }
 0x252   :  { %227 = vsyncpa [#allocation4 + $0x1], 1 }

</bundles_post_ra>
